<compile_context>
chip_gen: v7x
topology: tpu7x:2x2x1
jax: 0.10.0
libtpu: 0.0.40
codegen_flags: <defaults>
</compile_context>

<pallas_src>
import jax
import jax.numpy as jnp
from jax.experimental import pallas as pl
from jax.experimental.pallas import tpu as pltpu


def decoder_cell_kernel(trg_ref, prev_ref, ctx_ref, w_ref, b_ref, out_ref):
    prev_s = prev_ref[...]

    # (B, E) | (B, H) | (B, 2H)  ->  (B, E+3H); with E=H=32 this is exactly 128 lanes.
    x = jnp.concatenate([trg_ref[...], prev_s, ctx_ref[...]], axis=1)

    # Single fused MXU matmul + one broadcast bias add.
    # Columns [:H]  -> reset-gate pre-activation
    # Columns [H:]  -> candidate (prev_s_tilde) pre-activation
    fused = jnp.dot(x, w_ref[...], preferred_element_type=jnp.float32) + b_ref[...]

    H = out_ref.shape[1]
    reset_gate = jax.nn.sigmoid(fused[:, :H])
    s_tilde = jnp.tanh(fused[:, H:])

    # (1 - r) * prev + r * tilde  ==  prev + r * (tilde - prev)
    out_ref[...] = (prev_s + reset_gate * (s_tilde - prev_s)).astype(out_ref.dtype)


def pack_decoder_params(p, hidden_dim):
    """Fuse the 6 Linear layers into one (E+H+2H, 2H) weight and one (1, 2H) bias.

    Only the reset-gate half of the 2H-wide gate projections is kept: the update
    gate is computed but unused in the reference forward, so its columns are dead.
    Done once outside the kernel (constant across decode steps).
    """
    H = hidden_dim
    w_reset = jnp.concatenate([p["wi"][:, :H], p["wh"][:, :H], p["wc"][:, :H]], axis=0)
    w_tilde = jnp.concatenate([p["wii"], p["whi"], p["wci"]], axis=0)
    w_fused = jnp.concatenate([w_reset, w_tilde], axis=1)                # (E+3H, 2H)
    b_fused = jnp.concatenate(
        [p["bi"][:, :H] + p["bh"][:, :H] + p["bc"][:, :H],
         p["bii"] + p["bhi"] + p["bci"]],
        axis=1,
    )                                                                    # (1, 2H)
    return w_fused, b_fused


def decoder_cell(trg_word, prev_s, ctx, w_fused, b_fused):
    B = trg_word.shape[0]
    H = prev_s.shape[1]
    args = (trg_word, prev_s, ctx, w_fused, b_fused)
    return pl.pallas_call(
        decoder_cell_kernel,
        out_shape=jax.ShapeDtypeStruct((B, H), jnp.float32),
        in_specs=[pl.BlockSpec(memory_space=pltpu.MemorySpace.VMEM)] * len(args),
        out_specs=pl.BlockSpec(memory_space=pltpu.MemorySpace.VMEM),
        input_output_aliases={1: 0},   # output reuses prev_s's (B, H) f32 buffer
    )(*args)


def _init_linear(key, in_dim, out_dim):
    """Deterministic Linear init; weight stored transposed as (in, out)."""
    kw, kb = jax.random.split(key)
    bound = 1.0 / jnp.sqrt(in_dim)
    w_t = jax.random.uniform(kw, (in_dim, out_dim), jnp.float32, -bound, bound)
    b = jax.random.uniform(kb, (1, out_dim), jnp.float32, -bound, bound)
    return w_t, b


def decoder_cell_ref(trg_word, prev_s, ctx, p):
    """Pure-JAX reference mirroring the PyTorch forward (incl. unused update gate)."""
    gates = (trg_word @ p["wi"] + p["bi"]
             + prev_s @ p["wh"] + p["bh"]
             + ctx @ p["wc"] + p["bc"])
    H = prev_s.shape[1]
    reset_gate = jax.nn.sigmoid(gates[:, :H])
    s_tilde = jnp.tanh(trg_word @ p["wii"] + p["bii"]
                       + prev_s @ p["whi"] + p["bhi"]
                       + ctx @ p["wci"] + p["bci"])
    return (1.0 - reset_gate) * prev_s + reset_gate * s_tilde


if __name__ == "__main__":
    B, E, H = 8, 32, 32  # batch, embed_dim, hidden_dim  (E + H + 2H = 128)

    key = jax.random.PRNGKey(0)
    keys = jax.random.split(key, 10)

    trg_word = jax.random.normal(keys[0], (B, E), jnp.float32)
    prev_s = jax.random.normal(keys[1], (B, H), jnp.float32)
    ctx = jax.random.normal(keys[2], (B, 2 * H), jnp.float32)

    wi, bi = _init_linear(keys[3], E, 2 * H)        # input_weights
    wh, bh = _init_linear(keys[4], H, 2 * H)        # hidden_weights
    wc, bc = _init_linear(keys[5], 2 * H, 2 * H)    # ctx_weights
    wii, bii = _init_linear(keys[6], E, H)          # input_in
    whi, bhi = _init_linear(keys[7], H, H)          # hidden_in
    wci, bci = _init_linear(keys[8], 2 * H, H)      # ctx_in

    params = dict(wi=wi, bi=bi, wh=wh, bh=bh, wc=wc, bc=bc,
                  wii=wii, bii=bii, whi=whi, bhi=bhi, wci=wci, bci=bci)

    w_fused, b_fused = pack_decoder_params(params, H)
    w_fused = jax.block_until_ready(w_fused)

    # Compute reference first (output aliases prev_s's buffer).
    ref = decoder_cell_ref(trg_word, prev_s, ctx, params)

    out = decoder_cell(trg_word, prev_s, ctx, w_fused, b_fused)
    out = jax.block_until_ready(out)

    assert out.shape == (B, H)
    assert jnp.allclose(out, ref, atol=1e-5, rtol=1e-5), "mismatch vs reference"

    print("KERNEL_OK")
</pallas_src>

<mosaic_0001>
module attributes {stable_mosaic.version = 11 : i64} {
  func.func @decoder_cell_kernel(%arg0: memref<8x32xf32, #tpu.memory_space<vmem>>, %arg1: memref<8x32xf32, #tpu.memory_space<vmem>>, %arg2: memref<8x64xf32, #tpu.memory_space<vmem>>, %arg3: memref<128x64xf32, #tpu.memory_space<vmem>>, %arg4: memref<1x64xf32, #tpu.memory_space<vmem>>, %arg5: memref<8x32xf32, #tpu.memory_space<vmem>>) attributes {dimension_semantics = [], scalar_prefetch = 0 : i64, scratch_operands = 0 : i64, tpu.core_type = #tpu.core_type<tc>} {
    %c0 = arith.constant 0 : index
    %c0_0 = arith.constant 0 : index
    %0 = vector.load %arg1[%c0, %c0_0] : memref<8x32xf32, #tpu.memory_space<vmem>>, vector<8x32xf32>
    %c0_1 = arith.constant 0 : index
    %c0_2 = arith.constant 0 : index
    %1 = vector.load %arg0[%c0_1, %c0_2] : memref<8x32xf32, #tpu.memory_space<vmem>>, vector<8x32xf32>
    %c0_3 = arith.constant 0 : index
    %c0_4 = arith.constant 0 : index
    %2 = vector.load %arg2[%c0_3, %c0_4] : memref<8x64xf32, #tpu.memory_space<vmem>>, vector<8x64xf32>
    %3 = tpu.concatenate %1, %0, %2 in 1 : vector<8x32xf32>, vector<8x32xf32>, vector<8x64xf32> -> vector<8x128xf32>
    %c0_5 = arith.constant 0 : index
    %c0_6 = arith.constant 0 : index
    %4 = vector.load %arg3[%c0_5, %c0_6] : memref<128x64xf32, #tpu.memory_space<vmem>>, vector<128x64xf32>
    %cst = arith.constant dense<0.000000e+00> : vector<8x64xf32>
    %5 = tpu.matmul %3, %4, %cst {dimension_numbers = #tpu.dot_dimension_numbers<[1], [0], [0], [1], [0, 0, 1, 1], [], []>} : vector<8x128xf32>, vector<128x64xf32>, vector<8x64xf32> -> vector<8x64xf32>
    %c0_7 = arith.constant 0 : index
    %c0_8 = arith.constant 0 : index
    %6 = vector.load %arg4[%c0_7, %c0_8] : memref<1x64xf32, #tpu.memory_space<vmem>>, vector<1x64xf32>
    %7 = vector.broadcast %6 : vector<1x64xf32> to vector<8x64xf32>
    %8 = arith.addf %5, %7 : vector<8x64xf32>
    %9 = vector.extract_strided_slice %8 {offsets = [0, 0], sizes = [8, 32], strides = [1, 1]} : vector<8x64xf32> to vector<8x32xf32>
    %10 = arith.negf %9 : vector<8x32xf32>
    %11 = math.exp %10 : vector<8x32xf32>
    %cst_9 = arith.constant 1.000000e+00 : f32
    %12 = vector.broadcast %cst_9 : f32 to vector<8x32xf32>
    %13 = arith.addf %12, %11 : vector<8x32xf32>
    %14 = arith.divf %12, %13 : vector<8x32xf32>
    %15 = vector.extract_strided_slice %8 {offsets = [0, 32], sizes = [8, 32], strides = [1, 1]} : vector<8x64xf32> to vector<8x32xf32>
    %16 = math.tanh %15 : vector<8x32xf32>
    %17 = arith.subf %16, %0 : vector<8x32xf32>
    %18 = arith.mulf %14, %17 : vector<8x32xf32>
    %19 = arith.addf %0, %18 : vector<8x32xf32>
    %c0_10 = arith.constant 0 : index
    %c0_11 = arith.constant 0 : index
    %20 = vector.load %arg5[%c0_10, %c0_11] : memref<8x32xf32, #tpu.memory_space<vmem>>, vector<8x32xf32>
    tpu.vector_store %arg5[%c0_10, %c0_11], %19 {strides = array<i32>} : memref<8x32xf32, #tpu.memory_space<vmem>>, vector<8x32xf32>,
    return
  }
}

</mosaic_0001>

<bundles_post_ra>
// kernel: tpu_custom_call.1
= control target key start
LH: loop header
LB: loop body
LE: loop exit
PB: predicated region body
PF: predicated region fallthrough
CT: control target
= control target key end

     0   :  { %10 = vsyncpa [#allocation3], 0  ;;  %s436_s0 = inlined_call_operand.vmem [shape: f32[8,32], index: 0, kind: input, shape index: {}]   ;;  %s437_s1 = inlined_call_operand.hbm [shape: f32[8,32], index: 1, kind: input, shape index: {}, may-alias: {1,5}]   ;;  %s438_s2 = inlined_call_operand.vmem [shape: f32[8,64], index: 2, kind: input, shape index: {}]   ;;  %s439_s3 = inlined_call_operand.vmem [shape: f32[128,64], index: 3, kind: input, shape index: {}]   ;;  %s440_s4 = inlined_call_operand.vmem [shape: f32[1,64], index: 4, kind: input, shape index: {}]   ;;  %s441_s5 = inlined_call_operand.hbm [shape: f32[8,32], index: 5, kind: output, shape index: {}, may-alias: {1,5}]  }
   0x1   :  { %11 = vsyncpa [#allocation4], 0  ;;  %s311_s18 = smov [#allocation2]   ;;  %s263_s22 = scalar_lea.hbm %s437_s1, 128 }
   0x2   :  { %s20_s19 = sshll.u32 %s311_s18, 4  ;;  %p264_p0 = scmp.ne.s32.totalorder %s437_s1, %s263_s22  ;;  %s21_s19 = int_to_ptr.vmem [resolvable:$true] %s20_s19 }
   0x3   :  { %p267_p1 = scmp.lt.u32.totalorder %s263_s22, %s437_s1 }
   0x5   :  { %p269_p2 = pnand %p267_p1, %p264_p0 }
   0x7   :  { %272 = shalt.err (!%p269_p2)
}
   0x8   :  { %s273_s27 = scalar_lea.vmem %s21_s19, 128  ;;  %p278_p4 = scmp.lt.s32.totalorder %s21_s19, %s21_s19 }
   0x9   :  { %p274_p3 = scmp.ne.s32.totalorder %s21_s19, %s273_s27  ;;  %p279_p5 = scmp.lt.s32.totalorder %s273_s27, %s273_s27 }
   0xb   :  { %p280_p6 = por %p279_p5, %p278_p4 }
   0xd   :  { %p281_p7 = pnand %p280_p6, %p274_p3 }
   0xf   :  { %284 = shalt.err (!%p281_p7)
}
  0x10   :  { %23 = dma.hbm_to_vmem [thread:$0]  %s437_s1, 128, %s21_s19, [#allocation3]  }
  0x11   :  { %307 = dma.done.wait [#allocation3], 128  }
  0x12   :  { %308 = vsyncadd [#allocation3], 4294967168  ;;  %v312_v0 = vmov 0.0|0.0   ;;  %vm313_vm0 = vmmov 0   ;;  %v314_v1 = vmov 0.0   ;;  %v361_v2 = vld [vmem:[#allocation2] sm:$0xff] }
  0x13   :  { %225 = vmatprep.subr.bf16.mxu0 %v312_v0  ;;  %222 = vmatprep.mubr.msk.f32.mxu0 %vm313_vm0, %v314_v1  ;;  %v48_v3 = vld [vmem:[%s439_s3] sm:$0xff]  ;;  %s315_s7 = smov 32   ;;  %v49_v4 = vld [vmem:[%s439_s3 + $0x8] sm:$0xff]  ;;  %v50_v5 = vld [vmem:[%s439_s3 + $0x10] sm:$0xff]  ;;  %s316_s15 = smov 64   ;;  %vm44_vm1 = vcmask 261120  }
  0x14   :  { %37 = vrot.lane.b32.xlu0 %v361_v2, %s315_s7  ;;  %v51_v6 = vld [vmem:[%s439_s3 + $0x18] sm:$0xff]  ;;  %v35_v7 = vld [vmem:[%s438_s2] sm:$0xff]  ;;  %v226_v8 = vpack.c.bf16 %v49_v4, %v48_v3  ;;  %v53_v11 = vld [vmem:[%s439_s3 + $0x28] sm:$0xff]  ;;  %vm46_vm2 = vcmask 523264  }
  0x15   :  { %v229_v9 = vpack.c.bf16 %v51_v6, %v50_v5  ;;  %v52_v10 = vld [vmem:[%s439_s3 + $0x20] sm:$0xff]  ;;  %v54_v13 = vld [vmem:[%s439_s3 + $0x30] sm:$0xff]  ;;  %v55_v14 = vld [vmem:[%s439_s3 + $0x38] sm:$0xff] }
  0x16   :  { %227 = vmatpush3.bf16.msra.mxu0 %v226_v8  ;;  %v232_v12 = vpack.c.bf16 %v53_v11, %v52_v10  ;;  %v235_v15 = vpack.c.bf16 %v55_v14, %v54_v13  ;;  %v56_v16 = vld [vmem:[%s439_s3 + $0x40] sm:$0xff]  ;;  %v57_v17 = vld [vmem:[%s439_s3 + $0x48] sm:$0xff]  ;;  %v58_v19 = vld [vmem:[%s439_s3 + $0x50] sm:$0xff] }
  0x17   :  { %228 = vmatprep.subr.bf16.mxu0 %v312_v0  ;;  %v238_v18 = vpack.c.bf16 %v57_v17, %v56_v16  ;;  %v59_v20 = vld [vmem:[%s439_s3 + $0x58] sm:$0xff]  ;;  %v60_v22 = vld [vmem:[%s439_s3 + $0x60] sm:$0xff]  ;;  %v61_v23 = vld [vmem:[%s439_s3 + $0x68] sm:$0xff] }
  0x18   :  { %41 = vrot.lane.b32.xlu0 %v35_v7, %s316_s15  ;;  %v241_v21 = vpack.c.bf16 %v59_v20, %v58_v19  ;;  %v244_v24 = vpack.c.bf16 %v61_v23, %v60_v22  ;;  %v62_v25 = vld [vmem:[%s439_s3 + $0x70] sm:$0xff]  ;;  %v63_v26 = vld [vmem:[%s439_s3 + $0x78] sm:$0xff]  ;;  %v34_v29 = vld [vmem:[%s436_s0] sm:$0xff]  ;;  %s317_s3 = smov 96   ;;  %s318_s0 = smov [#allocation5]  }
  0x19   :  { %v247_v27 = vpack.c.bf16 %v63_v26, %v62_v25  ;;  %v171_v33 = vld [vmem:[%s440_s4] ss:$0 sm:$0xff]  ;;  %s162_s17 = sshll.u32 %s318_s0, 4  ;;  %s163_s17 = int_to_ptr.vmem [resolvable:$true] %s162_s17 }
  0x1a   :  { %230 = vmatpush3.bf16.msra.mxu0 %v229_v9  ;;  %s285_s4 = scalar_lea.vmem %s163_s17, 128  ;;  %p290_p9 = scmp.lt.s32.totalorder %s163_s17, %s163_s17 }
  0x1b   :  { %231 = vmatprep.subr.bf16.mxu0 %v312_v0  ;;  %p286_p8 = scmp.ne.s32.totalorder %s163_s17, %s285_s4  ;;  %p291_p10 = scmp.lt.s32.totalorder %s285_s4, %s285_s4 }
  0x1d   :  { %p292_p11 = por %p291_p10, %p290_p9 }
  0x1e   :  { %233 = vmatpush3.bf16.msra.mxu0 %v232_v12 }
  0x1f   :  { %234 = vmatprep.subr.bf16.mxu0 %v312_v0  ;;  %p293_p12 = pnand %p292_p11, %p286_p8 }
  0x22   :  { %236 = vmatpush3.bf16.msra.mxu0 %v235_v15 }
  0x23   :  { %237 = vmatprep.subr.bf16.mxu0 %v312_v0 }
  0x26   :  { %239 = vmatpush3.bf16.msra.mxu0 %v238_v18 }
  0x27   :  { %240 = vmatprep.subr.bf16.mxu0 %v312_v0 }
  0x2a   :  { %242 = vmatpush3.bf16.msra.mxu0 %v241_v21 }
  0x2b   :  { %243 = vmatprep.subr.bf16.mxu0 %v312_v0 }
  0x2e   :  { %245 = vmatpush3.bf16.msra.mxu0 %v244_v24 }
  0x2f   :  { %246 = vmatprep.subr.bf16.mxu0 %v312_v0 }
  0x32   :  { %248 = vmatpush3.bf16.msra.mxu0 %v247_v27 }
  0x86   :  { %v38_v28 = vpop.permute.xlu0 %37 }
  0x87   :  { %v45_v30 = vsel %vm44_vm1, %v34_v29, %v38_v28 }
  0x8a   :  { %v42_v31 = vpop.permute.xlu0 %41 }
  0x8b   :  { %v47_v32 = vsel %vm46_vm2, %v45_v30, %v42_v31 }
  0x8c   :  { %223 = vmatmul.mubr.f32.vlgmr.msra.gmra.mrb[0].mxu0 %v47_v32 }
 0x15f   :  { %v137_v34 = vpop.f32.mrb[0].mxu0 }
 0x160   :  { %v138_v35 = vadd.f32 %v171_v33, %v137_v34  ;;  %v224_v36 = vpop.f32.mrb[1].mxu0 }
 0x162   :  { %257 = vtanh.f32 %v138_v35  ;;  %v172_v39 = vmul.f32 -1.442695, %v138_v35 }
 0x164   :  { %259 = vpow2.f32 %v172_v39 }
 0x16c   :  { %v258_v37 = vpop.eup %257 }
 0x16d   :  { %v148_v38 = vsub.f32 %v258_v37, %v38_v28 }
 0x16e   :  { %v260_v40 = vpop.eup %259 }
 0x16f   :  { %150 = vrot.lane.b32.xlu1 %v148_v38, %s317_s3  ;;  %v144_v41 = vadd.f32 1.0, %v260_v40 }
 0x171   :  { %261 = vrcp.f32 %v144_v41 }
 0x17b   :  { %v262_v42 = vpop.eup %261 }
 0x1e1   :  { %v151_v43 = vpop.permute.xlu1 %150 }
 0x1e2   :  { %v153_v44 = vmul.f32 %v262_v42, %v151_v43 }
 0x1e4   :  { %v154_v45 = vadd.f32 %v153_v44, %v361_v2 }
 0x1e6   :  { %155 = vst.msk [vmem:[#allocation5] sm:$0xff] %vm44_vm1, %v154_v45 }
 0x1e7   :  { %296 = shalt.err (!%p293_p12)
}
 0x1e8   :  { %s297_s20 = scalar_lea.hbm %s441_s5, 128 }
 0x1e9   :  { %p298_p13 = scmp.ne.s32.totalorder %s441_s5, %s297_s20  ;;  %p301_p0 = scmp.lt.u32.totalorder %s297_s20, %s441_s5 }
 0x1eb   :  { %p303_p1 = pnand %p301_p0, %p298_p13 }
 0x1ed   :  { %306 = shalt.err (!%p303_p1)
}
 0x1ee   :  { %165 = dma.vmem_to_hbm [thread:$0]  %s163_s17, 128, %s441_s5, [#allocation4]  }
 0x1ef   :  { %309 = dma.done.wait [#allocation4], 128  }
 0x1f0   :  { %310 = vsyncadd [#allocation4], 4294967168 }
 0x1f1   :  { %169 = vsyncpa [#allocation3], 1 }
 0x1f2   :  { %170 = vsyncpa [#allocation4], 1 }

</bundles_post_ra>
